<compile_context>
chip_gen: v7x
topology: tpu7x:2x2x1
jax: 0.10.0
libtpu: 0.0.40
codegen_flags: <defaults>
</compile_context>

<pallas_src>
import jax
import jax.numpy as jnp
from jax.experimental import pallas as pl
from jax.experimental.pallas import tpu as pltpu


def _round_up(x, m):
    return (x + m - 1) // m * m


def classifier_kernel(x_ref, mask_ref, w1_ref, b1_ref, w2_ref, b2_ref, out_ref):
    # Stage 1: fused (video_proj ++ ques_proj) -> lin1, ReLU.
    # x is the lane-concatenated [v_last, q_first] activations (bf16);
    # w1 is the pre-folded [Dv+Dq, H] weight (bf16); accumulate in f32 on MXU.
    h = jnp.dot(x_ref[...], w1_ref[...],
                preferred_element_type=jnp.float32) + b1_ref[...]
    h = jnp.maximum(h, 0.0)

    # Stage 2: lin2 (+ additive output mask).  Padded output columns carry a
    # large negative bias so they vanish in the softmax.
    logits = (jnp.dot(h.astype(w2_ref.dtype), w2_ref[...],
                      preferred_element_type=jnp.float32)
              + b2_ref[...] + mask_ref[...])

    # Numerically-stable softmax along the (lane-dense, 128-wide) last dim.
    m = jnp.max(logits, axis=-1, keepdims=True)
    e = jnp.exp(logits - m)
    inv = pl.reciprocal(jnp.sum(e, axis=-1, keepdims=True), approx=True)
    out_ref[...] = (e * inv).astype(out_ref.dtype)


def classifier_forward(video_enc, ques_enc, ques_mask, output_mask, params,
                       *, row_tile=256):
    """video_enc: [B,QPV,Sv,Dv], ques_enc: [B,QPV,Sq,Dq],
       ques_mask: [B,QPV,Sq] (unused, as in the reference forward),
       output_mask: [B,QPV,OUT].  Returns [B,QPV,OUT] float32."""
    del ques_mask  # not used by the reference forward either
    B, QPV, _, Dv = video_enc.shape
    Dq = ques_enc.shape[-1]
    OUT = output_mask.shape[-1]
    H = params["wv"].shape[1]
    N = B * QPV
    K = Dv + Dq

    # ---- trace-time algebra: fold the v/q projections into lin1 ----------
    w1a = params["w1"][:H, :]
    w1b = params["w1"][H:, :]
    w1f = jnp.concatenate([params["wv"] @ w1a, params["wq"] @ w1b], axis=0)  # [K,H]
    b1f = params["bv"] @ w1a + params["bq"] @ w1b + params["b1"]             # [1,H]

    # ---- glue: slice last/first tokens, flatten, lane-concat --------------
    v_last = video_enc[:, :, -1, :].reshape(N, Dv)
    q_first = ques_enc[:, :, 0, :].reshape(N, Dq)
    x = jnp.concatenate([v_last, q_first], axis=-1)       # [N, K]
    mask2d = output_mask.reshape(N, OUT)

    # ---- layout: pad rows to tile multiple, pad OUT up to 128 lanes -------
    NEG = -1e30
    OUT_P = _round_up(OUT, 128)
    rt = min(row_tile, _round_up(N, 8))
    N_P = _round_up(N, rt)
    grid = (N_P // rt,)

    x_p = jnp.pad(x, ((0, N_P - N), (0, 0))).astype(jnp.bfloat16)
    mask_p = jnp.pad(mask2d, ((0, N_P - N), (0, OUT_P - OUT))).astype(jnp.float32)
    w2p = jnp.pad(params["w2"], ((0, 0), (0, OUT_P - OUT))).astype(jnp.bfloat16)
    b2p = jnp.pad(params["b2"], ((0, 0), (0, OUT_P - OUT)),
                  constant_values=NEG).astype(jnp.float32)
    w1f = w1f.astype(jnp.bfloat16)
    b1f = b1f.astype(jnp.float32)

    row_spec = lambda d: pl.BlockSpec((rt, d), lambda i: (i, 0))

    def build_call(weight_mode):
        def const_spec(shape):
            idx = lambda i: (0,) * len(shape)
            if weight_mode is None:
                return pl.BlockSpec(shape, idx)
            return pl.BlockSpec(shape, idx, pipeline_mode=weight_mode)

        return pl.pallas_call(
            classifier_kernel,
            out_shape=jax.ShapeDtypeStruct((N_P, OUT_P), jnp.float32),
            grid_spec=pltpu.PrefetchScalarGridSpec(
                num_scalar_prefetch=0,
                grid=grid,
                in_specs=[
                    row_spec(K),              # x (concat of v_last / q_first)
                    row_spec(OUT_P),          # additive output mask (padded)
                    const_spec((K, H)),       # folded lin1 weight
                    const_spec((1, H)),       # folded lin1 bias
                    const_spec((H, OUT_P)),   # lin2 weight (lane-padded)
                    const_spec((1, OUT_P)),   # lin2 bias (padding = -1e30)
                ],
                out_specs=row_spec(OUT_P),
            ),
            compiler_params=pltpu.CompilerParams(
                dimension_semantics=("parallel",)),
        )

    args = (x_p, mask_p, w1f, b1f, w2p, b2p)
    try:
        # Grid-invariant weights: request single buffering to halve their VMEM.
        out2d = jax.block_until_ready(build_call(pl.Buffered(1))(*args))
    except Exception:
        # Fallback for JAX versions that reject buffer_count=1.
        out2d = build_call(None)(*args)

    return out2d[:N, :OUT].reshape(B, QPV, OUT)


def init_params(key, video_dim, ques_dim, hidden, out_dim):
    """Deterministic PyTorch-Linear-style uniform init. Weights are stored
    as [in_dim, out_dim] (transposed vs torch) so the kernel does x @ W."""
    ks = jax.random.split(key, 8)

    def lin(kw, kb, fan_in, fan_out):
        bound = 1.0 / jnp.sqrt(fan_in)
        w = jax.random.uniform(kw, (fan_in, fan_out), jnp.float32, -bound, bound)
        b = jax.random.uniform(kb, (1, fan_out), jnp.float32, -bound, bound)
        return w, b

    wv, bv = lin(ks[0], ks[1], video_dim, hidden)
    wq, bq = lin(ks[2], ks[3], ques_dim, hidden)
    w1, b1 = lin(ks[4], ks[5], 2 * hidden, hidden)
    w2, b2 = lin(ks[6], ks[7], hidden, out_dim)
    return dict(wv=wv, bv=bv, wq=wq, bq=bq, w1=w1, b1=b1, w2=w2, b2=b2)


def reference_forward(video_enc, ques_enc, output_mask, p):
    """Faithful f32 reference (un-fused), mirrors the PyTorch module."""
    v = video_enc[:, :, -1, :] @ p["wv"] + p["bv"][0]
    q = ques_enc[:, :, 0, :] @ p["wq"] + p["bq"][0]
    o = jnp.concatenate([v, q], axis=-1) @ p["w1"] + p["b1"][0]
    o = jnp.maximum(o, 0.0)
    o = o @ p["w2"] + p["b2"][0] + output_mask
    return jax.nn.softmax(o, axis=-1)


if __name__ == "__main__":
    # Small shapes implied by the forward:
    B, QPV = 2, 4
    SEQ_V, SEQ_Q = 8, 8
    VIDEO_DIM, QUES_DIM = 32, 32
    HIDDEN, OUT_DIM = 32, 16

    key = jax.random.PRNGKey(0)
    k_v, k_q, k_m, k_p = jax.random.split(key, 4)

    video_enc = jax.random.normal(k_v, (B, QPV, SEQ_V, VIDEO_DIM), jnp.float32)
    ques_enc = jax.random.normal(k_q, (B, QPV, SEQ_Q, QUES_DIM), jnp.float32)
    ques_mask = jnp.ones((B, QPV, SEQ_Q), jnp.float32)
    # additive mask: 0 for valid logits, large negative for masked ones
    mask_bits = jax.random.bernoulli(k_m, 0.3, (B, QPV, OUT_DIM))
    output_mask = jnp.where(mask_bits, -1e9, 0.0).astype(jnp.float32)

    params = init_params(k_p, VIDEO_DIM, QUES_DIM, HIDDEN, OUT_DIM)

    out = classifier_forward(video_enc, ques_enc, ques_mask, output_mask, params)
    out = jax.block_until_ready(out)

    ref = reference_forward(video_enc, ques_enc, output_mask, params)
    assert out.shape == (B, QPV, OUT_DIM)
    # bf16 matmul operands + approx reciprocal => compare at ~1e-2 tolerance
    assert jnp.allclose(out, ref, atol=1e-2, rtol=1e-2), "mismatch vs JAX reference"

    print("KERNEL_OK")
</pallas_src>

<mosaic_0001>
module attributes {stable_mosaic.version = 11 : i64} {
  func.func @classifier_kernel(%arg0: i32, %arg1: memref<8x64xbf16, #tpu.memory_space<vmem>>, %arg2: memref<8x128xf32, #tpu.memory_space<vmem>>, %arg3: memref<64x32xbf16, #tpu.memory_space<vmem>>, %arg4: memref<1x32xf32, #tpu.memory_space<vmem>>, %arg5: memref<32x128xbf16, #tpu.memory_space<vmem>>, %arg6: memref<1x128xf32, #tpu.memory_space<vmem>>, %arg7: memref<8x128xf32, #tpu.memory_space<vmem>>) attributes {dimension_semantics = [#tpu.dimension_semantics<parallel>], iteration_bounds = array<i64: 1>, scalar_prefetch = 0 : i64, scratch_operands = 0 : i64, tpu.core_type = #tpu.core_type<tc>, window_params = [{transform_indices = @transform_0, window_bounds = array<i64: 8, 64>}, {transform_indices = @transform_1, window_bounds = array<i64: 8, 128>}, {pipeline_mode = #tpu.pipeline_mode<synchronous>, transform_indices = @transform_2, window_bounds = array<i64: 64, 32>}, {pipeline_mode = #tpu.pipeline_mode<synchronous>, transform_indices = @transform_3, window_bounds = array<i64: 1, 32>}, {pipeline_mode = #tpu.pipeline_mode<synchronous>, transform_indices = @transform_4, window_bounds = array<i64: 32, 128>}, {pipeline_mode = #tpu.pipeline_mode<synchronous>, transform_indices = @transform_5, window_bounds = array<i64: 1, 128>}, {transform_indices = @transform_6, window_bounds = array<i64: 8, 128>}]} {
    %c0 = arith.constant 0 : index
    %c0_0 = arith.constant 0 : index
    %0 = vector.load %arg1[%c0, %c0_0] : memref<8x64xbf16, #tpu.memory_space<vmem>>, vector<8x64xbf16>
    %c0_1 = arith.constant 0 : index
    %c0_2 = arith.constant 0 : index
    %1 = vector.load %arg3[%c0_1, %c0_2] : memref<64x32xbf16, #tpu.memory_space<vmem>>, vector<64x32xbf16>
    %cst = arith.constant dense<0.000000e+00> : vector<8x32xf32>
    %2 = tpu.matmul %0, %1, %cst {dimension_numbers = #tpu.dot_dimension_numbers<[1], [0], [0], [1], [0, 0, 1, 1], [], []>} : vector<8x64xbf16>, vector<64x32xbf16>, vector<8x32xf32> -> vector<8x32xf32>
    %c0_3 = arith.constant 0 : index
    %c0_4 = arith.constant 0 : index
    %3 = vector.load %arg4[%c0_3, %c0_4] : memref<1x32xf32, #tpu.memory_space<vmem>>, vector<1x32xf32>
    %4 = vector.broadcast %3 : vector<1x32xf32> to vector<8x32xf32>
    %5 = arith.addf %2, %4 : vector<8x32xf32>
    %cst_5 = arith.constant 0.000000e+00 : f32
    %6 = vector.broadcast %cst_5 : f32 to vector<8x32xf32>
    %7 = arith.maximumf %5, %6 : vector<8x32xf32>
    %8 = arith.truncf %7 : vector<8x32xf32> to vector<8x32xbf16>
    %c0_6 = arith.constant 0 : index
    %c0_7 = arith.constant 0 : index
    %9 = vector.load %arg5[%c0_6, %c0_7] : memref<32x128xbf16, #tpu.memory_space<vmem>>, vector<32x128xbf16>
    %cst_8 = arith.constant dense<0.000000e+00> : vector<8x128xf32>
    %10 = tpu.matmul %8, %9, %cst_8 {dimension_numbers = #tpu.dot_dimension_numbers<[1], [0], [0], [1], [0, 0, 1, 1], [], []>} : vector<8x32xbf16>, vector<32x128xbf16>, vector<8x128xf32> -> vector<8x128xf32>
    %c0_9 = arith.constant 0 : index
    %c0_10 = arith.constant 0 : index
    %11 = vector.load %arg6[%c0_9, %c0_10] : memref<1x128xf32, #tpu.memory_space<vmem>>, vector<1x128xf32>
    %12 = vector.broadcast %11 : vector<1x128xf32> to vector<8x128xf32>
    %13 = arith.addf %10, %12 : vector<8x128xf32>
    %c0_11 = arith.constant 0 : index
    %c0_12 = arith.constant 0 : index
    %14 = vector.load %arg2[%c0_11, %c0_12] : memref<8x128xf32, #tpu.memory_space<vmem>>, vector<8x128xf32>
    %15 = arith.addf %13, %14 : vector<8x128xf32>
    %cst_13 = arith.constant dense<0xFF800000> : vector<8xf32>
    %16 = vector.multi_reduction <maximumf>, %15, %cst_13 [1] : vector<8x128xf32> to vector<8xf32>
    %17 = vector.shape_cast %16 : vector<8xf32> to vector<8x1xf32>
    %18 = vector.broadcast %17 : vector<8x1xf32> to vector<8x128xf32>
    %19 = arith.subf %15, %18 : vector<8x128xf32>
    %20 = math.exp %19 : vector<8x128xf32>
    %cst_14 = arith.constant dense<0.000000e+00> : vector<8xf32>
    %21 = vector.multi_reduction <add>, %20, %cst_14 [1] : vector<8x128xf32> to vector<8xf32>
    %22 = vector.shape_cast %21 : vector<8xf32> to vector<8x1xf32>
    %23 = tpu.reciprocal %22 {approx = true} : vector<8x1xf32> -> vector<8x1xf32>
    %24 = vector.broadcast %23 : vector<8x1xf32> to vector<8x128xf32>
    %25 = arith.mulf %20, %24 : vector<8x128xf32>
    %c0_15 = arith.constant 0 : index
    %c0_16 = arith.constant 0 : index
    %26 = vector.load %arg7[%c0_15, %c0_16] : memref<8x128xf32, #tpu.memory_space<vmem>>, vector<8x128xf32>
    tpu.vector_store %arg7[%c0_15, %c0_16], %25 {strides = array<i32>} : memref<8x128xf32, #tpu.memory_space<vmem>>, vector<8x128xf32>,
    return
  }
  func.func @transform_0(%arg0: i32) -> (i32, i32) {
    %c0_i32 = arith.constant 0 : i32
    %c0_i32_0 = arith.constant 0 : i32
    return %arg0, %c0_i32 : i32, i32
  }
  func.func @transform_1(%arg0: i32) -> (i32, i32) {
    %c0_i32 = arith.constant 0 : i32
    %c0_i32_0 = arith.constant 0 : i32
    return %arg0, %c0_i32 : i32, i32
  }
  func.func @transform_2(%arg0: i32) -> (i32, i32) {
    %c0_i32 = arith.constant 0 : i32
    %c0_i32_0 = arith.constant 0 : i32
    %c0_i32_1 = arith.constant 0 : i32
    return %c0_i32, %c0_i32_0 : i32, i32
  }
  func.func @transform_3(%arg0: i32) -> (i32, i32) {
    %c0_i32 = arith.constant 0 : i32
    %c0_i32_0 = arith.constant 0 : i32
    %c0_i32_1 = arith.constant 0 : i32
    return %c0_i32, %c0_i32_0 : i32, i32
  }
  func.func @transform_4(%arg0: i32) -> (i32, i32) {
    %c0_i32 = arith.constant 0 : i32
    %c0_i32_0 = arith.constant 0 : i32
    %c0_i32_1 = arith.constant 0 : i32
    return %c0_i32, %c0_i32_0 : i32, i32
  }
  func.func @transform_5(%arg0: i32) -> (i32, i32) {
    %c0_i32 = arith.constant 0 : i32
    %c0_i32_0 = arith.constant 0 : i32
    %c0_i32_1 = arith.constant 0 : i32
    return %c0_i32, %c0_i32_0 : i32, i32
  }
  func.func @transform_6(%arg0: i32) -> (i32, i32) {
    %c0_i32 = arith.constant 0 : i32
    %c0_i32_0 = arith.constant 0 : i32
    return %arg0, %c0_i32 : i32, i32
  }
}

module attributes {stable_mosaic.version = 11 : i64} {
  func.func @classifier_kernel(%arg0: i32, %arg1: memref<8x64xbf16, #tpu.memory_space<vmem>>, %arg2: memref<8x128xf32, #tpu.memory_space<vmem>>, %arg3: memref<64x32xbf16, #tpu.memory_space<vmem>>, %arg4: memref<1x32xf32, #tpu.memory_space<vmem>>, %arg5: memref<32x128xbf16, #tpu.memory_space<vmem>>, %arg6: memref<1x128xf32, #tpu.memory_space<vmem>>, %arg7: memref<8x128xf32, #tpu.memory_space<vmem>>) attributes {dimension_semantics = [#tpu.dimension_semantics<parallel>], iteration_bounds = array<i64: 1>, scalar_prefetch = 0 : i64, scratch_operands = 0 : i64, tpu.core_type = #tpu.core_type<tc>, window_params = [{transform_indices = @transform_0, window_bounds = array<i64: 8, 64>}, {transform_indices = @transform_1, window_bounds = array<i64: 8, 128>}, {pipeline_mode = #tpu.pipeline_mode<synchronous>, transform_indices = @transform_2, window_bounds = array<i64: 64, 32>}, {pipeline_mode = #tpu.pipeline_mode<synchronous>, transform_indices = @transform_3, window_bounds = array<i64: 1, 32>}, {pipeline_mode = #tpu.pipeline_mode<synchronous>, transform_indices = @transform_4, window_bounds = array<i64: 32, 128>}, {pipeline_mode = #tpu.pipeline_mode<synchronous>, transform_indices = @transform_5, window_bounds = array<i64: 1, 128>}, {transform_indices = @transform_6, window_bounds = array<i64: 8, 128>}]} {
    %c0 = arith.constant 0 : index
    %c0_0 = arith.constant 0 : index
    %0 = vector.load %arg1[%c0, %c0_0] : memref<8x64xbf16, #tpu.memory_space<vmem>>, vector<8x64xbf16>
    %c0_1 = arith.constant 0 : index
    %c0_2 = arith.constant 0 : index
    %1 = vector.load %arg3[%c0_1, %c0_2] : memref<64x32xbf16, #tpu.memory_space<vmem>>, vector<64x32xbf16>
    %cst = arith.constant dense<0.000000e+00> : vector<8x32xf32>
    %2 = tpu.matmul %0, %1, %cst {dimension_numbers = #tpu.dot_dimension_numbers<[1], [0], [0], [1], [0, 0, 1, 1], [], []>} : vector<8x64xbf16>, vector<64x32xbf16>, vector<8x32xf32> -> vector<8x32xf32>
    %c0_3 = arith.constant 0 : index
    %c0_4 = arith.constant 0 : index
    %3 = vector.load %arg4[%c0_3, %c0_4] : memref<1x32xf32, #tpu.memory_space<vmem>>, vector<1x32xf32>
    %4 = vector.broadcast %3 : vector<1x32xf32> to vector<8x32xf32>
    %5 = arith.addf %2, %4 : vector<8x32xf32>
    %cst_5 = arith.constant 0.000000e+00 : f32
    %6 = vector.broadcast %cst_5 : f32 to vector<8x32xf32>
    %7 = arith.maximumf %5, %6 : vector<8x32xf32>
    %8 = arith.truncf %7 : vector<8x32xf32> to vector<8x32xbf16>
    %c0_6 = arith.constant 0 : index
    %c0_7 = arith.constant 0 : index
    %9 = vector.load %arg5[%c0_6, %c0_7] : memref<32x128xbf16, #tpu.memory_space<vmem>>, vector<32x128xbf16>
    %cst_8 = arith.constant dense<0.000000e+00> : vector<8x128xf32>
    %10 = tpu.matmul %8, %9, %cst_8 {dimension_numbers = #tpu.dot_dimension_numbers<[1], [0], [0], [1], [0, 0, 1, 1], [], []>} : vector<8x32xbf16>, vector<32x128xbf16>, vector<8x128xf32> -> vector<8x128xf32>
    %c0_9 = arith.constant 0 : index
    %c0_10 = arith.constant 0 : index
    %11 = vector.load %arg6[%c0_9, %c0_10] : memref<1x128xf32, #tpu.memory_space<vmem>>, vector<1x128xf32>
    %12 = vector.broadcast %11 : vector<1x128xf32> to vector<8x128xf32>
    %13 = arith.addf %10, %12 : vector<8x128xf32>
    %c0_11 = arith.constant 0 : index
    %c0_12 = arith.constant 0 : index
    %14 = vector.load %arg2[%c0_11, %c0_12] : memref<8x128xf32, #tpu.memory_space<vmem>>, vector<8x128xf32>
    %15 = arith.addf %13, %14 : vector<8x128xf32>
    %cst_13 = arith.constant dense<0xFF800000> : vector<8xf32>
    %16 = vector.multi_reduction <maximumf>, %15, %cst_13 [1] : vector<8x128xf32> to vector<8xf32>
    %17 = vector.shape_cast %16 : vector<8xf32> to vector<8x1xf32>
    %18 = vector.broadcast %17 : vector<8x1xf32> to vector<8x128xf32>
    %19 = arith.subf %15, %18 : vector<8x128xf32>
    %20 = math.exp %19 : vector<8x128xf32>
    %cst_14 = arith.constant dense<0.000000e+00> : vector<8xf32>
    %21 = vector.multi_reduction <add>, %20, %cst_14 [1] : vector<8x128xf32> to vector<8xf32>
    %22 = vector.shape_cast %21 : vector<8xf32> to vector<8x1xf32>
    %23 = tpu.reciprocal %22 {approx = true} : vector<8x1xf32> -> vector<8x1xf32>
    %24 = vector.broadcast %23 : vector<8x1xf32> to vector<8x128xf32>
    %25 = arith.mulf %20, %24 : vector<8x128xf32>
    %c0_15 = arith.constant 0 : index
    %c0_16 = arith.constant 0 : index
    %26 = vector.load %arg7[%c0_15, %c0_16] : memref<8x128xf32, #tpu.memory_space<vmem>>, vector<8x128xf32>
    tpu.vector_store %arg7[%c0_15, %c0_16], %25 {strides = array<i32>} : memref<8x128xf32, #tpu.memory_space<vmem>>, vector<8x128xf32>,
    return
  }
  func.func @transform_0(%arg0: i32) -> (i32, i32) {
    %c0_i32 = arith.constant 0 : i32
    %c0_i32_0 = arith.constant 0 : i32
    return %arg0, %c0_i32 : i32, i32
  }
  func.func @transform_1(%arg0: i32) -> (i32, i32) {
    %c0_i32 = arith.constant 0 : i32
    %c0_i32_0 = arith.constant 0 : i32
    return %arg0, %c0_i32 : i32, i32
  }
  func.func @transform_2(%arg0: i32) -> (i32, i32) {
    %c0_i32 = arith.constant 0 : i32
    %c0_i32_0 = arith.constant 0 : i32
    %c0_i32_1 = arith.constant 0 : i32
    return %c0_i32, %c0_i32_0 : i32, i32
  }
  func.func @transform_3(%arg0: i32) -> (i32, i32) {
    %c0_i32 = arith.constant 0 : i32
    %c0_i32_0 = arith.constant 0 : i32
    %c0_i32_1 = arith.constant 0 : i32
    return %c0_i32, %c0_i32_0 : i32, i32
  }
  func.func @transform_4(%arg0: i32) -> (i32, i32) {
    %c0_i32 = arith.constant 0 : i32
    %c0_i32_0 = arith.constant 0 : i32
    %c0_i32_1 = arith.constant 0 : i32
    return %c0_i32, %c0_i32_0 : i32, i32
  }
  func.func @transform_5(%arg0: i32) -> (i32, i32) {
    %c0_i32 = arith.constant 0 : i32
    %c0_i32_0 = arith.constant 0 : i32
    %c0_i32_1 = arith.constant 0 : i32
    return %c0_i32, %c0_i32_0 : i32, i32
  }
  func.func @transform_6(%arg0: i32) -> (i32, i32) {
    %c0_i32 = arith.constant 0 : i32
    %c0_i32_0 = arith.constant 0 : i32
    return %arg0, %c0_i32 : i32, i32
  }
}

</mosaic_0001>

<bundles_post_ra>
// kernel: tpu_custom_call.1
= control target key start
LH: loop header
LB: loop body
LE: loop exit
PB: predicated region body
PF: predicated region fallthrough
CT: control target
= control target key end

     0   :  { %v279_v1 = vmov 0.0   ;;  %vm280_vm0 = vmmov 0   ;;  %s359_s0 = inlined_call_operand.vmem [shape: bf16[8,64], index: 0, kind: input, shape index: {}]   ;;  %s360_s1 = inlined_call_operand.vmem [shape: f32[8,128], index: 1, kind: input, shape index: {}]   ;;  %s361_s2 = inlined_call_operand.vmem [shape: bf16[64,32], index: 2, kind: input, shape index: {}]   ;;  %s362_s3 = inlined_call_operand.vmem [shape: f32[1,32], index: 3, kind: input, shape index: {}]   ;;  %s363_s4 = inlined_call_operand.vmem [shape: bf16[32,128], index: 4, kind: input, shape index: {}]   ;;  %s364_s5 = inlined_call_operand.vmem [shape: f32[1,128], index: 5, kind: input, shape index: {}]   ;;  %s365_s6 = inlined_call_operand.hbm [shape: f32[8,128], index: 6, kind: output, shape index: {}]  }
   0x1   :  { %v245_v0 = vld [vmem:[%s361_s2] sm:$0xff]   ;;  %222 = vmatprep.subr.bf16.mxu0 %v279_v1  ;;  %234 = vmatprep.subr.bf16.mxu1 %v279_v1  ;;  %v246_v2 = vld [vmem:[%s361_s2 + $0x8] sm:$0xff]   ;;  %v247_v3 = vld [vmem:[%s361_s2 + $0x10] sm:$0xff]  }
   0x2   :  { %223 = vmatpush3.bf16.msra.mxu0 %v245_v0  ;;  %230 = vmatprep.mubr.msk.bf16.mxu0 %vm280_vm0, %v279_v1 }
   0x3   :  { %224 = vmatprep.subr.bf16.mxu0 %v279_v1  ;;  %238 = vmatprep.mubr.msk.bf16.mxu1 %vm280_vm0, %v279_v1 }
   0x6   :  { %225 = vmatpush3.bf16.msra.mxu0 %v246_v2 }
   0x7   :  { %11 = vsyncpa [#allocation3], 0  ;;  %226 = vmatprep.subr.bf16.mxu0 %v279_v1  ;;  %v248_v4 = vld [vmem:[%s361_s2 + $0x18] sm:$0xff]   ;;  %v25_v5 = vld [vmem:[%s359_s0] sm:$0xf]  ;;  %vm65_vm1 = vcmask 523264  }
   0x8   :  { %v249_v6 = vld [vmem:[%s363_s4] sm:$0xff]   ;;  %v250_v7 = vld [vmem:[%s363_s4 + $0x8] sm:$0xff]   ;;  %vm134_vm2 = vcmask 261120  }
   0x9   :  { %235 = vmatpush3.bf16.msra.mxu1 %v249_v6  ;;  %v204_v8 = vld [vmem:[%s362_s3] ss:$0 sm:$0xff]  ;;  %s281_s3 = smov [#allocation2]  }
   0xa   :  { %227 = vmatpush3.bf16.msra.mxu0 %v247_v3  ;;  %236 = vmatprep.subr.bf16.mxu1 %v279_v1  ;;  %v210_v16 = vld [vmem:[%s364_s5] ss:$0 sm:$0xff]  ;;  %s196_s5 = sshll.u32 %s281_s3, 4  ;;  %s197_s5 = int_to_ptr.vmem [resolvable:$true] %s196_s5 }
   0xb   :  { %228 = vmatprep.subr.bf16.mxu0 %v279_v1  ;;  %v178_v18 = vld [vmem:[%s360_s1] sm:$0xff]  ;;  %s255_s1 = scalar_lea.vmem %s197_s5, 128  ;;  %p260_p1 = scmp.lt.s32.totalorder %s197_s5, %s197_s5 }
   0xc   :  { %p256_p0 = scmp.ne.s32.totalorder %s197_s5, %s255_s1  ;;  %p261_p2 = scmp.lt.s32.totalorder %s255_s1, %s255_s1 }
   0xd   :  { %237 = vmatpush3.bf16.msra.mxu1 %v250_v7 }
   0xe   :  { %229 = vmatpush3.bf16.msra.mxu0 %v248_v4  ;;  %p262_p3 = por %p261_p2, %p260_p1 }
  0x10   :  { %p263_p4 = pnand %p262_p3, %p256_p0 }
  0x11   :  { %231 = vmatmul.mubr.msk.bf16.vlgmr.msra.gmra.mrb[0].mxu0 %vm65_vm1, %v25_v5 }
  0xe4   :  { %v103_v9 = vpop.f32.mrb[0].mxu0 }
  0xe5   :  { %v104_v10 = vadd.f32 %v204_v8, %v103_v9  ;;  %v232_v11 = vpop.f32.mrb[1].mxu0 }
  0xe6   :  { %v106_v12 = vpop.f32.mrb[2].mxu0 }
  0xe7   :  { %v109_v13 = vmax.f32 %v104_v10, 0.0  ;;  %v233_v14 = vpop.f32.mrb[3].mxu0 }
  0xe9   :  { %v110_v15 = vpack.c.bf16 %v109_v13, %v109_v13 }
  0xeb   :  { %239 = vmatmul.mubr.msk.bf16.vlgmr.msra.gmra.mrb[0].mxu1 %vm134_vm2, %v110_v15 }
 0x1be   :  { %v172_v17 = vpop.f32.mrb[0].mxu1 }
 0x1bf   :  { %v173_v19 = vadd.f32 %v210_v16, %v172_v17  ;;  %v240_v20 = vpop.f32.mrb[1].mxu1 }
 0x1c0   :  { %v175_v21 = vpop.f32.mrb[2].mxu1 }
 0x1c1   :  { %v241_v22 = vpop.f32.mrb[3].mxu1  ;;  %v179_v23 = vadd.f32 %v178_v18, %v173_v19 }
 0x1c3   :  { %180 = vmax.xlane.f32.xlu0 %v179_v23 }
 0x250   :  { %v181_v24 = vpop.xlane.xlu0 %180 }
 0x251   :  { %v182_v25 = vsub.f32 %v179_v23, %v181_v24 }
 0x253   :  { %v183_v26 = vmul.f32 1.442695, %v182_v25 }
 0x255   :  { %251 = vpow2.f32 %v183_v26 }
 0x25f   :  { %v252_v27 = vpop.eup %251 }
 0x260   :  { %185 = vadd.xlane.f32.xlu0 %v252_v27 }
 0x2ed   :  { %v186_v28 = vpop.xlane.xlu0 %185 }
 0x2ee   :  { %253 = vrcp.f32 %v186_v28 }
 0x2f8   :  { %v254_v29 = vpop.eup %253 }
 0x2f9   :  { %v188_v30 = vmul.f32 %v254_v29, %v252_v27 }
 0x2fb   :  { %189 = vst [vmem:[#allocation2] sm:$0xff] %v188_v30 }
 0x2fc   :  { %266 = shalt.err (!%p263_p4)
}
 0x2fd   :  { %s267_s16 = scalar_lea.hbm %s365_s6, 128 }
 0x2fe   :  { %p268_p5 = scmp.ne.s32.totalorder %s365_s6, %s267_s16  ;;  %p271_p6 = scmp.lt.u32.totalorder %s267_s16, %s365_s6 }
 0x300   :  { %p273_p7 = pnand %p271_p6, %p268_p5 }
 0x302   :  { %276 = shalt.err (!%p273_p7)
}
 0x303   :  { %199 = dma.vmem_to_hbm [thread:$0]  %s197_s5, 128, %s365_s6, [#allocation3]  }
 0x304   :  { %277 = dma.done.wait [#allocation3], 128  }
 0x305   :  { %278 = vsyncadd [#allocation3], 4294967168 }
 0x306   :  { %203 = vsyncpa [#allocation3], 1 }

// kernel: tpu_custom_call.1
= control target key start
LH: loop header
LB: loop body
LE: loop exit
PB: predicated region body
PF: predicated region fallthrough
CT: control target
= control target key end

     0   :  { %v279_v1 = vmov 0.0   ;;  %vm280_vm0 = vmmov 0   ;;  %s359_s0 = inlined_call_operand.vmem [shape: bf16[8,64], index: 0, kind: input, shape index: {}]   ;;  %s360_s1 = inlined_call_operand.vmem [shape: f32[8,128], index: 1, kind: input, shape index: {}]   ;;  %s361_s2 = inlined_call_operand.vmem [shape: bf16[64,32], index: 2, kind: input, shape index: {}]   ;;  %s362_s3 = inlined_call_operand.vmem [shape: f32[1,32], index: 3, kind: input, shape index: {}]   ;;  %s363_s4 = inlined_call_operand.vmem [shape: bf16[32,128], index: 4, kind: input, shape index: {}]   ;;  %s364_s5 = inlined_call_operand.vmem [shape: f32[1,128], index: 5, kind: input, shape index: {}]   ;;  %s365_s6 = inlined_call_operand.hbm [shape: f32[8,128], index: 6, kind: output, shape index: {}]  }
   0x1   :  { %v245_v0 = vld [vmem:[%s361_s2] sm:$0xff]   ;;  %222 = vmatprep.subr.bf16.mxu0 %v279_v1  ;;  %234 = vmatprep.subr.bf16.mxu1 %v279_v1  ;;  %v246_v2 = vld [vmem:[%s361_s2 + $0x8] sm:$0xff]   ;;  %v247_v3 = vld [vmem:[%s361_s2 + $0x10] sm:$0xff]  }
   0x2   :  { %223 = vmatpush3.bf16.msra.mxu0 %v245_v0  ;;  %230 = vmatprep.mubr.msk.bf16.mxu0 %vm280_vm0, %v279_v1 }
   0x3   :  { %224 = vmatprep.subr.bf16.mxu0 %v279_v1  ;;  %238 = vmatprep.mubr.msk.bf16.mxu1 %vm280_vm0, %v279_v1 }
   0x6   :  { %225 = vmatpush3.bf16.msra.mxu0 %v246_v2 }
   0x7   :  { %11 = vsyncpa [#allocation3], 0  ;;  %226 = vmatprep.subr.bf16.mxu0 %v279_v1  ;;  %v248_v4 = vld [vmem:[%s361_s2 + $0x18] sm:$0xff]   ;;  %v25_v5 = vld [vmem:[%s359_s0] sm:$0xf]  ;;  %vm65_vm1 = vcmask 523264  }
   0x8   :  { %v249_v6 = vld [vmem:[%s363_s4] sm:$0xff]   ;;  %v250_v7 = vld [vmem:[%s363_s4 + $0x8] sm:$0xff]   ;;  %vm134_vm2 = vcmask 261120  }
   0x9   :  { %235 = vmatpush3.bf16.msra.mxu1 %v249_v6  ;;  %v204_v8 = vld [vmem:[%s362_s3] ss:$0 sm:$0xff]  ;;  %s281_s3 = smov [#allocation2]  }
   0xa   :  { %227 = vmatpush3.bf16.msra.mxu0 %v247_v3  ;;  %236 = vmatprep.subr.bf16.mxu1 %v279_v1  ;;  %v210_v16 = vld [vmem:[%s364_s5] ss:$0 sm:$0xff]  ;;  %s196_s5 = sshll.u32 %s281_s3, 4  ;;  %s197_s5 = int_to_ptr.vmem [resolvable:$true] %s196_s5 }
   0xb   :  { %228 = vmatprep.subr.bf16.mxu0 %v279_v1  ;;  %v178_v18 = vld [vmem:[%s360_s1] sm:$0xff]  ;;  %s255_s1 = scalar_lea.vmem %s197_s5, 128  ;;  %p260_p1 = scmp.lt.s32.totalorder %s197_s5, %s197_s5 }
   0xc   :  { %p256_p0 = scmp.ne.s32.totalorder %s197_s5, %s255_s1  ;;  %p261_p2 = scmp.lt.s32.totalorder %s255_s1, %s255_s1 }
   0xd   :  { %237 = vmatpush3.bf16.msra.mxu1 %v250_v7 }
   0xe   :  { %229 = vmatpush3.bf16.msra.mxu0 %v248_v4  ;;  %p262_p3 = por %p261_p2, %p260_p1 }
  0x10   :  { %p263_p4 = pnand %p262_p3, %p256_p0 }
  0x11   :  { %231 = vmatmul.mubr.msk.bf16.vlgmr.msra.gmra.mrb[0].mxu0 %vm65_vm1, %v25_v5 }
  0xe4   :  { %v103_v9 = vpop.f32.mrb[0].mxu0 }
  0xe5   :  { %v104_v10 = vadd.f32 %v204_v8, %v103_v9  ;;  %v232_v11 = vpop.f32.mrb[1].mxu0 }
  0xe6   :  { %v106_v12 = vpop.f32.mrb[2].mxu0 }
  0xe7   :  { %v109_v13 = vmax.f32 %v104_v10, 0.0  ;;  %v233_v14 = vpop.f32.mrb[3].mxu0 }
  0xe9   :  { %v110_v15 = vpack.c.bf16 %v109_v13, %v109_v13 }
  0xeb   :  { %239 = vmatmul.mubr.msk.bf16.vlgmr.msra.gmra.mrb[0].mxu1 %vm134_vm2, %v110_v15 }
 0x1be   :  { %v172_v17 = vpop.f32.mrb[0].mxu1 }
 0x1bf   :  { %v173_v19 = vadd.f32 %v210_v16, %v172_v17  ;;  %v240_v20 = vpop.f32.mrb[1].mxu1 }
 0x1c0   :  { %v175_v21 = vpop.f32.mrb[2].mxu1 }
 0x1c1   :  { %v241_v22 = vpop.f32.mrb[3].mxu1  ;;  %v179_v23 = vadd.f32 %v178_v18, %v173_v19 }
 0x1c3   :  { %180 = vmax.xlane.f32.xlu0 %v179_v23 }
 0x250   :  { %v181_v24 = vpop.xlane.xlu0 %180 }
 0x251   :  { %v182_v25 = vsub.f32 %v179_v23, %v181_v24 }
 0x253   :  { %v183_v26 = vmul.f32 1.442695, %v182_v25 }
 0x255   :  { %251 = vpow2.f32 %v183_v26 }
 0x25f   :  { %v252_v27 = vpop.eup %251 }
 0x260   :  { %185 = vadd.xlane.f32.xlu0 %v252_v27 }
 0x2ed   :  { %v186_v28 = vpop.xlane.xlu0 %185 }
 0x2ee   :  { %253 = vrcp.f32 %v186_v28 }
 0x2f8   :  { %v254_v29 = vpop.eup %253 }
 0x2f9   :  { %v188_v30 = vmul.f32 %v254_v29, %v252_v27 }
 0x2fb   :  { %189 = vst [vmem:[#allocation2] sm:$0xff] %v188_v30 }
 0x2fc   :  { %266 = shalt.err (!%p263_p4)
}
 0x2fd   :  { %s267_s16 = scalar_lea.hbm %s365_s6, 128 }
 0x2fe   :  { %p268_p5 = scmp.ne.s32.totalorder %s365_s6, %s267_s16  ;;  %p271_p6 = scmp.lt.u32.totalorder %s267_s16, %s365_s6 }
 0x300   :  { %p273_p7 = pnand %p271_p6, %p268_p5 }
 0x302   :  { %276 = shalt.err (!%p273_p7)
}
 0x303   :  { %199 = dma.vmem_to_hbm [thread:$0]  %s197_s5, 128, %s365_s6, [#allocation3]  }
 0x304   :  { %277 = dma.done.wait [#allocation3], 128  }
 0x305   :  { %278 = vsyncadd [#allocation3], 4294967168 }
 0x306   :  { %203 = vsyncpa [#allocation3], 1 }

</bundles_post_ra>
